<compile_context>
chip_gen: v5e
topology: v5e:2x2
jax: 0.10.0
libtpu: 0.0.40
codegen_flags: <defaults>
</compile_context>

<pallas_src>
import functools

import jax
import jax.numpy as jnp
import numpy as np
from jax.experimental import pallas as pl
from jax.experimental.pallas import tpu as pltpu

C_IN = 3        # the forward pass only makes sense for 3 input channels
HIDDEN = 300    # Conv2d(3, 300, 1)
K_PAD = 8       # conv1 contraction dim padded to a full sublane strip for the MXU


def _round_up(x, m):
    return (x + m - 1) // m * m


def _cdiv(a, b):
    return (a + b - 1) // b


def hsv_head_kernel(x_ref, w1_ref, b1_ref, b2_ref, o_ref, acc_ref, hsv_ref, *,
                    tile_p, total_p, half_tiles, n_pos, hidden_pad, needs_mask):
    # x_ref:   (1, 3, T)          channels on sublanes, pixels on lanes
    # w1_ref:  (hidden_pad, 8)    conv1 weight pre-scaled by |-0.01*w2|, sign-grouped,
    #                             zero-padded rows/cols
    # b1_ref:  (hidden_pad, 1)    conv1 bias, same scaling / ordering / padding
    # b2_ref:  (1, 1)             conv2 bias
    # o_ref:   (1, 1, 1, 1)       per-(batch, pixel-half) partial sum of sigmoids
    # acc_ref: (1, T)             running lane-dense partial sums
    # hsv_ref: (8, T)             MXU RHS staging (rows 3..7 stay zero)
    h = pl.program_id(1)   # pixel half (keeps v7x's 2nd TensorCore busy at small B)
    k = pl.program_id(2)   # pixel tile inside the half (reduction axis, innermost)

    @pl.when(k == 0)
    def _():
        acc_ref[...] = jnp.zeros_like(acc_ref)
        hsv_ref[C_IN:, :] = jnp.zeros((K_PAD - C_IN, tile_p), jnp.float32)

    x = x_ref[0]                                    # (3, T)
    r = x[0:1, :]                                   # (1, T)
    g = x[1:2, :]
    bl = x[2:3, :]

    mx = jnp.maximum(jnp.maximum(r, g), bl)         # per-pixel channel max  (1, T)
    mn = jnp.minimum(jnp.minimum(r, g), bl)         # per-pixel channel min  (1, T)
    md = (r + g + bl) - mx - mn                     # median of 3 == sum - max - min

    # Stage the HSV rows for the MXU (rows 3..7 are zero -> contribute nothing).
    hsv_ref[0:1, :] = mx - md                       # H
    hsv_ref[1:2, :] = mx - mn                       # S
    hsv_ref[2:3, :] = mx                            # V

    # Conv2d(3, 300, 1) on the MXU (kernel is VALU-bound; the MXU is otherwise idle).
    y = jnp.dot(w1_ref[...], hsv_ref[...],
                preferred_element_type=jnp.float32) + b1_ref[...]   # (hidden_pad, T)

    # -abs + LeakyReLU(0.01) fused: LeakyReLU(-|y|) == -0.01*|y|; |-0.01*w2| is already
    # folded into w1/b1, so only |.| and a sign-split sublane reduce remain (no multiply).
    y = jnp.abs(y)

    if n_pos == 0:
        z = -jnp.sum(y, axis=0, keepdims=True)
    elif n_pos == hidden_pad:
        z = jnp.sum(y, axis=0, keepdims=True)
    else:
        z = (jnp.sum(y[:n_pos], axis=0, keepdims=True)
             - jnp.sum(y[n_pos:], axis=0, keepdims=True))
    z = z + b2_ref[...]                             # (1, T)

    # sigmoid (exp on EUP; exact divide on the tiny (1, T) slab)
    sig = 1.0 / (1.0 + jnp.exp(-z))

    if not needs_mask:
        acc_ref[...] += sig
    else:
        start = (h * half_tiles + k) * tile_p       # global pixel offset of this tile
        straddles = start + tile_p > total_p

        @pl.when(jnp.logical_not(straddles))
        def _():
            acc_ref[...] += sig

        @pl.when(straddles)
        def _():
            lane = jax.lax.broadcasted_iota(jnp.int32, (1, tile_p), 1)
            valid = (start + lane) < total_p
            acc_ref[...] += jnp.where(valid, sig, 0.0)

    @pl.when(k == pl.num_programs(2) - 1)
    def _():
        o_ref[...] = jnp.sum(acc_ref[...], axis=1, keepdims=True).reshape(1, 1, 1, 1)


def _fold_params(w1, b1, w2, b2):
    """Host-side folding: scale w1/b1 by |-0.01*w2|, sign-group rows, pad to 8-row strips."""
    w1 = np.asarray(w1, np.float32).reshape(HIDDEN, C_IN)
    b1 = np.asarray(b1, np.float32).reshape(HIDDEN)
    w2 = np.asarray(w2, np.float32).reshape(HIDDEN)
    b2 = np.asarray(b2, np.float32).reshape(1, 1)

    w2s = -0.01 * w2                   # fused LeakyReLU(-|y|) slope folded into conv2
    scale = np.abs(w2s)
    w1s = scale[:, None] * w1
    b1s = scale * b1

    pos = w2s >= 0.0
    idx_pos = np.nonzero(pos)[0]
    idx_neg = np.nonzero(~pos)[0]
    n_pos = int(idx_pos.size)
    n_neg = int(idx_neg.size)
    n_pos_pad = _round_up(n_pos, 8)    # keep each sign group on whole (8,128) strips
    hidden_pad = max(8, _round_up(n_pos_pad + n_neg, 8))

    w1_k = np.zeros((hidden_pad, K_PAD), np.float32)
    b1_k = np.zeros((hidden_pad, 1), np.float32)
    w1_k[:n_pos, :C_IN] = w1s[idx_pos]
    b1_k[:n_pos, 0] = b1s[idx_pos]
    w1_k[n_pos_pad:n_pos_pad + n_neg, :C_IN] = w1s[idx_neg]
    b1_k[n_pos_pad:n_pos_pad + n_neg, 0] = b1s[idx_neg]
    return (jnp.asarray(w1_k), jnp.asarray(b1_k), jnp.asarray(b2),
            n_pos_pad, hidden_pad)


def hsv_head_forward(x_nchw, w1, b1, w2, b2):
    """x: (B, 3, H, W) f32.  w1: (300, 3), b1: (300,), w2: (1, 300), b2: (1,)."""
    B, C, H, W = x_nchw.shape
    assert C == C_IN, "forward only works with 3 input channels"
    P = H * W

    # v5e: keep the (~300, T) f32 intermediates inside the 16 MiB scoped-VMEM default.
    try:
        kind = jax.devices()[0].device_kind.lower()
    except Exception:
        kind = ""
    tile_p_max = 2048 if "v5" in kind else 4096

    # Balanced pixel tiling, forced even so the range splits into two equal halves.
    num_tiles = max(2, _round_up(_cdiv(P, tile_p_max), 2))
    tile_p = _round_up(_cdiv(P, num_tiles), 128)
    p_pad = num_tiles * tile_p
    half_tiles = num_tiles // 2

    # (B, C, H, W) -> (B, C, P): channels on sublanes, pixels on lanes (no transpose).
    x_bcp = jnp.asarray(x_nchw, jnp.float32).reshape(B, C, P)
    if p_pad != P:
        x_bcp = jnp.pad(x_bcp, ((0, 0), (0, 0), (0, p_pad - P)))

    w1_k, b1_k, b2_k, n_pos_pad, hidden_pad = _fold_params(w1, b1, w2, b2)

    kernel = functools.partial(
        hsv_head_kernel, tile_p=tile_p, total_p=P, half_tiles=half_tiles,
        n_pos=n_pos_pad, hidden_pad=hidden_pad, needs_mask=(p_pad != P))

    partial_sums = pl.pallas_call(
        kernel,
        out_shape=jax.ShapeDtypeStruct((B, 2, 1, 1), jnp.float32),
        grid_spec=pltpu.PrefetchScalarGridSpec(
            num_scalar_prefetch=0,
            grid=(B, 2, half_tiles),
            in_specs=[
                pl.BlockSpec((1, C_IN, tile_p),
                             lambda b, h, k: (b, 0, h * half_tiles + k)),
                pl.BlockSpec((hidden_pad, K_PAD), lambda b, h, k: (0, 0)),
                pl.BlockSpec((hidden_pad, 1), lambda b, h, k: (0, 0)),
                pl.BlockSpec((1, 1), lambda b, h, k: (0, 0)),
            ],
            out_specs=pl.BlockSpec((1, 1, 1, 1), lambda b, h, k: (b, h, 0, 0)),
            scratch_shapes=[pltpu.VMEM((1, tile_p), jnp.float32),
                            pltpu.VMEM((K_PAD, tile_p), jnp.float32)],
        ),
        compiler_params=pltpu.CompilerParams(
            # batch + pixel-half axes shard across v7x's two TensorCores;
            # pixel-tile (reduction) axis stays last and "arbitrary".
            dimension_semantics=("parallel", "parallel", "arbitrary"),
        ),
    )(x_bcp, w1_k, b1_k, b2_k)

    return jnp.sum(partial_sums.reshape(B, 2), axis=1) * (1.0 / P)


def hsv_head_reference(x_nchw, w1, b1, w2, b2):
    """Pure-JAX reference matching the reviewed forward exactly."""
    mx = jnp.max(x_nchw, axis=1, keepdims=True)
    mn = jnp.min(x_nchw, axis=1, keepdims=True)
    md = jnp.sum(x_nchw, axis=1, keepdims=True) - mx - mn       # median of 3 channels
    hsv = jnp.concatenate([mx - md, mx - mn, mx], axis=1)       # (B, 3, H, W)
    y = jnp.einsum("bchw,oc->bohw", hsv, w1) + b1[None, :, None, None]
    y = -jnp.abs(y)
    y = jnp.where(y >= 0, y, 0.01 * y)                          # LeakyReLU(0.01)
    y = jnp.einsum("bchw,oc->bohw", y, w2) + b2[None, :, None, None]
    y = jax.nn.sigmoid(y)
    return jnp.mean(y, axis=(1, 2, 3))


if __name__ == "__main__":
    key = jax.random.PRNGKey(0)
    kx, k1, k2, k3, k4 = jax.random.split(key, 5)

    B, H, W = 2, 16, 16
    x = jax.random.normal(kx, (B, C_IN, H, W), dtype=jnp.float32)

    # Deterministic parameter init (shapes follow nn.Conv2d(3,300,1) / nn.Conv2d(300,1,1)).
    w1 = jax.random.normal(k1, (HIDDEN, C_IN), dtype=jnp.float32) * (1.0 / np.sqrt(C_IN))
    b1 = jax.random.normal(k2, (HIDDEN,), dtype=jnp.float32) * 0.1
    w2 = jax.random.normal(k3, (1, HIDDEN), dtype=jnp.float32) * (1.0 / np.sqrt(HIDDEN))
    b2 = jax.random.normal(k4, (1,), dtype=jnp.float32) * 0.1

    out = jax.block_until_ready(hsv_head_forward(x, w1, b1, w2, b2))
    ref = jax.block_until_ready(hsv_head_reference(x, w1, b1, w2, b2))

    assert out.shape == (B,)
    np.testing.assert_allclose(np.asarray(out), np.asarray(ref), rtol=1e-4, atol=1e-5)
    print("KERNEL_OK")
</pallas_src>

<mosaic_0001>
module attributes {stable_mosaic.version = 11 : i64} {
  func.func @hsv_head_kernel(%arg0: i32, %arg1: i32, %arg2: i32, %arg3: memref<1x3x128xf32, #tpu.memory_space<vmem>>, %arg4: memref<304x8xf32, #tpu.memory_space<vmem>>, %arg5: memref<304x1xf32, #tpu.memory_space<vmem>>, %arg6: memref<1x1xf32, #tpu.memory_space<vmem>>, %arg7: memref<1x1x1x1xf32, #tpu.memory_space<vmem>>, %arg8: memref<1x128xf32, #tpu.memory_space<vmem>>, %arg9: memref<8x128xf32, #tpu.memory_space<vmem>>) attributes {dimension_semantics = [#tpu.dimension_semantics<parallel>, #tpu.dimension_semantics<parallel>, #tpu.dimension_semantics<arbitrary>], iteration_bounds = array<i64: 2, 2, 1>, scalar_prefetch = 0 : i64, scratch_operands = 2 : i64, tpu.core_type = #tpu.core_type<tc>, window_params = [{transform_indices = @transform_0, window_bounds = array<i64: 1, 3, 128>}, {pipeline_mode = #tpu.pipeline_mode<synchronous>, transform_indices = @transform_1, window_bounds = array<i64: 304, 8>}, {pipeline_mode = #tpu.pipeline_mode<synchronous>, transform_indices = @transform_2, window_bounds = array<i64: 304, 1>}, {pipeline_mode = #tpu.pipeline_mode<synchronous>, transform_indices = @transform_3, window_bounds = array<i64: 1, 1>}, {transform_indices = @transform_4, window_bounds = array<i64: 1, 1, 1, 1>}]} {
    %c0_i32 = arith.constant 0 : i32
    %0 = arith.cmpi eq, %arg2, %c0_i32 : i32
    %1 = arith.extui %0 : i1 to i32
    %c0_i32_0 = arith.constant 0 : i32
    %2 = arith.cmpi ne, %1, %c0_i32_0 : i32
    scf.if %2 {
      %cst_26 = arith.constant 0.000000e+00 : f32
      %51 = vector.broadcast %cst_26 : f32 to vector<1x128xf32>
      %c0_27 = arith.constant 0 : index
      %c0_28 = arith.constant 0 : index
      %52 = vector.load %arg8[%c0_27, %c0_28] : memref<1x128xf32, #tpu.memory_space<vmem>>, vector<1x128xf32>
      tpu.vector_store %arg8[%c0_27, %c0_28], %51 {strides = array<i32>} : memref<1x128xf32, #tpu.memory_space<vmem>>, vector<1x128xf32>,
      %cst_29 = arith.constant 0.000000e+00 : f32
      %53 = vector.broadcast %cst_29 : f32 to vector<5x128xf32>
      %c3 = arith.constant 3 : index
      %c0_30 = arith.constant 0 : index
      %54 = vector.load %arg9[%c3, %c0_30] : memref<8x128xf32, #tpu.memory_space<vmem>>, vector<5x128xf32>
      tpu.vector_store %arg9[%c3, %c0_30], %53 {strides = array<i32>} : memref<8x128xf32, #tpu.memory_space<vmem>>, vector<5x128xf32>,
    } else {
    }
    %c0 = arith.constant 0 : index
    %c0_1 = arith.constant 0 : index
    %c0_2 = arith.constant 0 : index
    %3 = vector.load %arg3[%c0, %c0_1, %c0_2] : memref<1x3x128xf32, #tpu.memory_space<vmem>>, vector<1x3x128xf32>
    %4 = vector.shape_cast %3 : vector<1x3x128xf32> to vector<3x128xf32>
    %5 = vector.extract_strided_slice %4 {offsets = [0, 0], sizes = [1, 128], strides = [1, 1]} : vector<3x128xf32> to vector<1x128xf32>
    %6 = vector.extract_strided_slice %4 {offsets = [1, 0], sizes = [1, 128], strides = [1, 1]} : vector<3x128xf32> to vector<1x128xf32>
    %7 = vector.extract_strided_slice %4 {offsets = [2, 0], sizes = [1, 128], strides = [1, 1]} : vector<3x128xf32> to vector<1x128xf32>
    %8 = arith.maximumf %5, %6 : vector<1x128xf32>
    %9 = arith.maximumf %8, %7 : vector<1x128xf32>
    %10 = arith.minimumf %5, %6 : vector<1x128xf32>
    %11 = arith.minimumf %10, %7 : vector<1x128xf32>
    %12 = arith.addf %5, %6 : vector<1x128xf32>
    %13 = arith.addf %12, %7 : vector<1x128xf32>
    %14 = arith.subf %13, %9 : vector<1x128xf32>
    %15 = arith.subf %14, %11 : vector<1x128xf32>
    %16 = arith.subf %9, %15 : vector<1x128xf32>
    %c0_3 = arith.constant 0 : index
    %c0_4 = arith.constant 0 : index
    %17 = vector.load %arg9[%c0_3, %c0_4] : memref<8x128xf32, #tpu.memory_space<vmem>>, vector<1x128xf32>
    tpu.vector_store %arg9[%c0_3, %c0_4], %16 {strides = array<i32>} : memref<8x128xf32, #tpu.memory_space<vmem>>, vector<1x128xf32>,
    %18 = arith.subf %9, %11 : vector<1x128xf32>
    %c1 = arith.constant 1 : index
    %c0_5 = arith.constant 0 : index
    %19 = vector.load %arg9[%c1, %c0_5] : memref<8x128xf32, #tpu.memory_space<vmem>>, vector<1x128xf32>
    tpu.vector_store %arg9[%c1, %c0_5], %18 {strides = array<i32>} : memref<8x128xf32, #tpu.memory_space<vmem>>, vector<1x128xf32>,
    %c2 = arith.constant 2 : index
    %c0_6 = arith.constant 0 : index
    %20 = vector.load %arg9[%c2, %c0_6] : memref<8x128xf32, #tpu.memory_space<vmem>>, vector<1x128xf32>
    tpu.vector_store %arg9[%c2, %c0_6], %9 {strides = array<i32>} : memref<8x128xf32, #tpu.memory_space<vmem>>, vector<1x128xf32>,
    %c0_7 = arith.constant 0 : index
    %c0_8 = arith.constant 0 : index
    %21 = vector.load %arg4[%c0_7, %c0_8] : memref<304x8xf32, #tpu.memory_space<vmem>>, vector<304x8xf32>
    %c0_9 = arith.constant 0 : index
    %c0_10 = arith.constant 0 : index
    %22 = vector.load %arg9[%c0_9, %c0_10] : memref<8x128xf32, #tpu.memory_space<vmem>>, vector<8x128xf32>
    %cst = arith.constant dense<0.000000e+00> : vector<304x128xf32>
    %23 = tpu.matmul %21, %22, %cst {dimension_numbers = #tpu.dot_dimension_numbers<[1], [0], [0], [1], [0, 0, 1, 1], [], []>} : vector<304x8xf32>, vector<8x128xf32>, vector<304x128xf32> -> vector<304x128xf32>
    %c0_11 = arith.constant 0 : index
    %c0_12 = arith.constant 0 : index
    %24 = vector.load %arg5[%c0_11, %c0_12] : memref<304x1xf32, #tpu.memory_space<vmem>>, vector<304x1xf32>
    %25 = vector.broadcast %24 : vector<304x1xf32> to vector<304x128xf32>
    %26 = arith.addf %23, %25 : vector<304x128xf32>
    %27 = math.absf %26 : vector<304x128xf32>
    %28 = vector.extract_strided_slice %27 {offsets = [0, 0], sizes = [152, 128], strides = [1, 1]} : vector<304x128xf32> to vector<152x128xf32>
    %cst_13 = arith.constant dense<0.000000e+00> : vector<128xf32>
    %29 = vector.multi_reduction <add>, %28, %cst_13 [0] : vector<152x128xf32> to vector<128xf32>
    %30 = vector.shape_cast %29 : vector<128xf32> to vector<1x128xf32>
    %31 = vector.extract_strided_slice %27 {offsets = [152, 0], sizes = [152, 128], strides = [1, 1]} : vector<304x128xf32> to vector<152x128xf32>
    %cst_14 = arith.constant dense<0.000000e+00> : vector<128xf32>
    %32 = vector.multi_reduction <add>, %31, %cst_14 [0] : vector<152x128xf32> to vector<128xf32>
    %33 = vector.shape_cast %32 : vector<128xf32> to vector<1x128xf32>
    %34 = arith.subf %30, %33 : vector<1x128xf32>
    %c0_15 = arith.constant 0 : index
    %c0_16 = arith.constant 0 : index
    %35 = vector.load %arg6[%c0_15, %c0_16] : memref<1x1xf32, #tpu.memory_space<vmem>>, vector<1x1xf32>
    %36 = vector.broadcast %35 : vector<1x1xf32> to vector<1x128xf32>
    %37 = arith.addf %34, %36 : vector<1x128xf32>
    %cst_17 = arith.constant 0.000000e+00 : f32
    %38 = vector.broadcast %cst_17 : f32 to vector<1x128xf32>
    %39 = arith.subf %38, %37 : vector<1x128xf32>
    %40 = math.exp %39 : vector<1x128xf32>
    %cst_18 = arith.constant 1.000000e+00 : f32
    %41 = vector.broadcast %cst_18 : f32 to vector<1x128xf32>
    %42 = arith.addf %41, %40 : vector<1x128xf32>
    %cst_19 = arith.constant 1.000000e+00 : f32
    %43 = vector.broadcast %cst_19 : f32 to vector<1x128xf32>
    %44 = arith.divf %43, %42 : vector<1x128xf32>
    %c0_20 = arith.constant 0 : index
    %c0_21 = arith.constant 0 : index
    %45 = vector.load %arg8[%c0_20, %c0_21] : memref<1x128xf32, #tpu.memory_space<vmem>>, vector<1x128xf32>
    %46 = arith.addf %45, %44 : vector<1x128xf32>
    %c0_22 = arith.constant 0 : index
    %c0_23 = arith.constant 0 : index
    %47 = vector.load %arg8[%c0_22, %c0_23] : memref<1x128xf32, #tpu.memory_space<vmem>>, vector<1x128xf32>
    tpu.vector_store %arg8[%c0_22, %c0_23], %46 {strides = array<i32>} : memref<1x128xf32, #tpu.memory_space<vmem>>, vector<1x128xf32>,
    %c0_i32_24 = arith.constant 0 : i32
    %48 = arith.cmpi eq, %arg2, %c0_i32_24 : i32
    %49 = arith.extui %48 : i1 to i32
    %c0_i32_25 = arith.constant 0 : i32
    %50 = arith.cmpi ne, %49, %c0_i32_25 : i32
    scf.if %50 {
      %c0_26 = arith.constant 0 : index
      %c0_27 = arith.constant 0 : index
      %51 = vector.load %arg8[%c0_26, %c0_27] : memref<1x128xf32, #tpu.memory_space<vmem>>, vector<1x128xf32>
      %cst_28 = arith.constant dense<0.000000e+00> : vector<1xf32>
      %52 = vector.multi_reduction <add>, %51, %cst_28 [1] : vector<1x128xf32> to vector<1xf32>
      %53 = vector.shape_cast %52 : vector<1xf32> to vector<1x1xf32>
      %54 = vector.shape_cast %53 : vector<1x1xf32> to vector<1x1x1x1xf32>
      %c0_29 = arith.constant 0 : index
      %c0_30 = arith.constant 0 : index
      %c0_31 = arith.constant 0 : index
      %c0_32 = arith.constant 0 : index
      %55 = vector.load %arg7[%c0_29, %c0_30, %c0_31, %c0_32] : memref<1x1x1x1xf32, #tpu.memory_space<vmem>>, vector<1x1x1x1xf32>
      tpu.vector_store %arg7[%c0_29, %c0_30, %c0_31, %c0_32], %54 {strides = array<i32>} : memref<1x1x1x1xf32, #tpu.memory_space<vmem>>, vector<1x1x1x1xf32>,
    } else {
    }
    return
  }
  func.func @transform_0(%arg0: i32, %arg1: i32, %arg2: i32) -> (i32, i32, i32) {
    %c1_i32 = arith.constant 1 : i32
    %0 = arith.muli %arg1, %c1_i32 : i32
    %1 = arith.addi %0, %arg2 : i32
    %c0_i32 = arith.constant 0 : i32
    %c0_i32_0 = arith.constant 0 : i32
    return %arg0, %c0_i32, %1 : i32, i32, i32
  }
  func.func @transform_1(%arg0: i32, %arg1: i32, %arg2: i32) -> (i32, i32) {
    %c0_i32 = arith.constant 0 : i32
    %c0_i32_0 = arith.constant 0 : i32
    %c0_i32_1 = arith.constant 0 : i32
    return %c0_i32, %c0_i32_0 : i32, i32
  }
  func.func @transform_2(%arg0: i32, %arg1: i32, %arg2: i32) -> (i32, i32) {
    %c0_i32 = arith.constant 0 : i32
    %c0_i32_0 = arith.constant 0 : i32
    %c0_i32_1 = arith.constant 0 : i32
    return %c0_i32, %c0_i32_0 : i32, i32
  }
  func.func @transform_3(%arg0: i32, %arg1: i32, %arg2: i32) -> (i32, i32) {
    %c0_i32 = arith.constant 0 : i32
    %c0_i32_0 = arith.constant 0 : i32
    %c0_i32_1 = arith.constant 0 : i32
    return %c0_i32, %c0_i32_0 : i32, i32
  }
  func.func @transform_4(%arg0: i32, %arg1: i32, %arg2: i32) -> (i32, i32, i32, i32) {
    %c0_i32 = arith.constant 0 : i32
    %c0_i32_0 = arith.constant 0 : i32
    %c0_i32_1 = arith.constant 0 : i32
    return %arg0, %arg1, %c0_i32, %c0_i32_0 : i32, i32, i32, i32
  }
}

</mosaic_0001>

<bundles_post_ra>
// kernel: tpu_custom_call.1
= control target key start
LH: loop header
LB: loop body
LE: loop exit
PB: predicated region body
PF: predicated region fallthrough
CT: control target
= control target key end

     0   :  { %s1161_s17 = smov 0   ;;  %s1163_s18 = smov 0   ;;  %s1612_s0 = inlined_call_operand.vmem [shape: f32[2,3,256], index: 0, kind: input, shape index: {}]   ;;  %s1613_s1 = inlined_call_operand.vmem [shape: f32[304,8], index: 1, kind: input, shape index: {}]   ;;  %s1614_s2 = inlined_call_operand.vmem [shape: f32[304,1], index: 2, kind: input, shape index: {}]   ;;  %s1615_s3 = inlined_call_operand.<no memory space> [shape: f32[1,1], index: 3, kind: input, shape index: {}]   ;;  %s1616_s4 = inlined_call_operand.vmem [shape: f32[2,2,1,1], index: 4, kind: output, shape index: {}]  }
   0x1   :  { %v9_v0 = vstv %s1615_s3  ;;  %s1165_s19 = smov 0   ;;  %s1167_s20 = smov 0  }
   0x2   :  { %10 = vst [vmem:[#allocation4] sm:$0x1] %v9_v0  ;;  %s1169_s21 = smov 0  }
   0x3 LB: > { %s31_s3 = sadd.s32 1, %s1121_s19  ;;  %s35_s22 = sadd.s32 1, %s1125_s20  ;;  %s1129_s21 = sphi %s1169_s21, %s16_s21   ;;  %s1125_s20 = sphi %s1167_s20, %s1620_s20   ;;  %s1121_s19 = sphi %s1165_s19, %s1619_s19   ;;  %s1117_s18 = sphi %s1163_s18, %s1618_s18   ;;  %s1113_s17 = sphi %s1161_s17, %s1617_s17  }
   0x4   : > { %p33_p0 = scmp.ge.s32.totalorder %s31_s3, 2  ;;  %p995_p1 = scmp.ge.s32.totalorder %s1129_s21, 1 }
   0x5   : > { %p194_p2 = scmp.lt.s32.totalorder %s1129_s21, 5 }
   0x6   : > { %s1622_s3 = smov (%p33_p0, %s31_s3), 0  ;;  %s1624_s22 = smov (!%p33_p0, %s35_s22), %s1125_s20 }
   0x7   : > { %p195_p3 = pnand %p995_p1, %p194_p2  ;;  %p37_p4 = scmp.ge.s32.totalorder %s1624_s22, 2 }
   0x8   : > { %p227_p5 = scmp.lt.s32.totalorder (!%p195_p3), %s1117_s18, 1  ;;  %p229_p6 = scmp.lt.s32.totalorder (!%p195_p3), %s1113_s17, 1 }
   0x9   : > { %s1626_s22 = smov (%p37_p4, %s1624_s22), 0  ;;  %198 = sbr.rel (%p195_p3) target bundleno = 456 (0x1c8), region = 36 }
   0xe   : > { %v311_v1 = vld [vmem:[%s1614_s2 + $0x20] sm:$0xff]  ;;  %v309_v2 = vld [vmem:[%s1614_s2 + $0x10] sm:$0xff]  ;;  %v1131_v4 = vmov 0   ;;  %s1628_s18 = smov (!%p227_p5, %s1117_s18), 1  ;;  %v1132_v5 = vmov 0.0   ;;  %s1630_s17 = smov (!%p229_p6, %s1113_s17), 1 }
   0xf   : > { %v307_v3 = vld [vmem:[%s1614_s2] sm:$0xff]  ;;  %1086 = vset.pattern.permute.xlu2 %v1131_v4  ;;  %1085 = vset.pattern.permute.xlu1 %v1131_v4  ;;  %248 = vst [vmem:[#allocation3 + $0x3] sm:$0x1f] %v1132_v5  ;;  %s996_s29 = sshll.u32 %s1628_s18, 1  ;;  %v312_v6 = vld [vmem:[%s1614_s2 + $0x28] sm:$0xff]  ;;  %v310_v7 = vld [vmem:[%s1614_s2 + $0x18] sm:$0xff] }
  0x10   : > { %1084 = vset.pattern.permute.xlu0 %v1131_v4  ;;  %367 = vperm.xlu2 %1086, %v311_v1   ;;  %247 = vst [vmem:[#allocation2] sm:$0x1] %v1132_v5  ;;  %s1204_s30 = sadd.s32 %s996_s29, %s1630_s17  ;;  %v308_v8 = vld [vmem:[%s1614_s2 + $0x8] sm:$0xff]  ;;  %v315_v18 = vld [vmem:[%s1614_s2 + $0x40] sm:$0xff]  ;;  %v314_v21 = vld [vmem:[%s1614_s2 + $0x38] sm:$0xff]  ;;  %vm535_vm0 = vcmask 64512  }
  0x11   : > { %357 = vperm.xlu1 %1085, %v309_v2   ;;  %347 = vperm.xlu0 %1084, %v307_v3   ;;  %s997_s5 = sshll.u32 %s1204_s30, 2  ;;  %v313_v22 = vld [vmem:[%s1614_s2 + $0x30] sm:$0xff]  ;;  %v318_v25 = vld [vmem:[%s1614_s2 + $0x58] sm:$0xff]  ;;  %v316_v27 = vld [vmem:[%s1614_s2 + $0x48] sm:$0xff]  ;;  %vm902_vm5 = vcmask 1040384   ;;  %vm906_vm6 = vcmask 0  }
  0x12   : > { %s234_s10 = scalar_lea.vmem %s1612_s0, %s997_s5  ;;  %v317_v26 = vld [vmem:[%s1614_s2 + $0x50] sm:$0xff]  ;;  %v268_v29 = vld [vmem:[%s1613_s1] sm:$0xff]  ;;  %v328_v33 = vld [vmem:[%s1614_s2 + $0xa8] sm:$0xff] }
  0x13   : > { %v249_v9 = vld [vmem:[%s234_s10] sm:$0x7]  ;;  %v278_v30 = vld [vmem:[%s1613_s1 + $0x50] sm:$0xff]  ;;  %v326_v35 = vld [vmem:[%s1614_s2 + $0x98] sm:$0xff]  ;;  %s242_s10 = scalar_lea.vmem %s1616_s4, %s1204_s30 }
  0x14   : > { %v251_v10 = vrot.slane %v249_v9, 1  ;;  %v254_v11 = vrot.slane %v249_v9, 2  ;;  %v288_v31 = vld [vmem:[%s1613_s1 + $0xa0] sm:$0xff]  ;;  %v298_v32 = vld [vmem:[%s1613_s1 + $0xf0] sm:$0xff]  ;;  %v269_v36 = vld [vmem:[%s1613_s1 + $0x8] sm:$0xff] }
  0x15   : > { %v327_v34 = vld [vmem:[%s1614_s2 + $0xa0] sm:$0xff]  ;;  %v279_v37 = vld [vmem:[%s1613_s1 + $0x58] sm:$0xff]  ;;  %v289_v38 = vld [vmem:[%s1613_s1 + $0xa8] sm:$0xff] }
  0x16   : > { %v253_v12 = vmax.f32 %v249_v9, %v251_v10  ;;  %v257_v13 = vmin.f32 %v249_v9, %v251_v10  ;;  %v259_v14 = vadd.f32 %v251_v10, %v249_v9  ;;  %v299_v39 = vld [vmem:[%s1613_s1 + $0xf8] sm:$0xff]  ;;  %v331_v40 = vld [vmem:[%s1614_s2 + $0xc0] sm:$0xff]  ;;  %v329_v42 = vld [vmem:[%s1614_s2 + $0xb0] sm:$0xff] }
  0x17   : > { %v330_v41 = vld [vmem:[%s1614_s2 + $0xb8] sm:$0xff]  ;;  %v270_v43 = vld [vmem:[%s1613_s1 + $0x10] sm:$0xff]  ;;  %v280_v44 = vld [vmem:[%s1613_s1 + $0x60] sm:$0xff] }
  0x18   : > { %372 = vperm.xlu2 %1086, %v312_v6   ;;  %v256_v15 = vmax.f32 %v253_v12, %v254_v11  ;;  %v258_v16 = vmin.f32 %v257_v13, %v254_v11  ;;  %v260_v17 = vadd.f32 %v259_v14, %v254_v11  ;;  %v290_v45 = vld [vmem:[%s1613_s1 + $0xb0] sm:$0xff]  ;;  %v300_v46 = vld [vmem:[%s1613_s1 + $0x100] sm:$0xff]  ;;  %v334_v47 = vld [vmem:[%s1614_s2 + $0xd8] sm:$0xff] }
  0x19   : > { %362 = vperm.xlu1 %1085, %v310_v7   ;;  %352 = vperm.xlu0 %1084, %v308_v8   ;;  %v333_v48 = vld [vmem:[%s1614_s2 + $0xd0] sm:$0xff]  ;;  %v332_v49 = vld [vmem:[%s1614_s2 + $0xc8] sm:$0xff]  ;;  %v271_v50 = vld [vmem:[%s1613_s1 + $0x18] sm:$0xff] }
  0x1a   : > { %v261_v19 = vsub.f32 %v260_v17, %v256_v15  ;;  %v265_v20 = vsub.f32 %v256_v15, %v258_v16  ;;  %267 = vst [vmem:[#allocation3 + $0x2] sm:$0x1] %v256_v15  ;;  %v281_v51 = vld [vmem:[%s1613_s1 + $0x68] sm:$0xff]  ;;  %v291_v52 = vld [vmem:[%s1613_s1 + $0xb8] sm:$0xff]  ;;  %v337_v54 = vld [vmem:[%s1614_s2 + $0xf0] sm:$0xff] }
  0x1b   : > { %v301_v53 = vld [vmem:[%s1613_s1 + $0x108] sm:$0xff]  ;;  %v335_v56 = vld [vmem:[%s1614_s2 + $0xe0] sm:$0xff]  ;;  %v282_v58 = vld [vmem:[%s1613_s1 + $0x70] sm:$0xff] }
  0x1c   : > { %v262_v23 = vsub.f32 %v261_v19, %v258_v16  ;;  %266 = vst [vmem:[#allocation3 + $0x1] sm:$0x1] %v265_v20  ;;  %v336_v55 = vld [vmem:[%s1614_s2 + $0xe8] sm:$0xff]  ;;  %v272_v57 = vld [vmem:[%s1613_s1 + $0x20] sm:$0xff]  ;;  %v302_v60 = vld [vmem:[%s1613_s1 + $0x110] sm:$0xff] }
  0x1d   : > { %v292_v59 = vld [vmem:[%s1613_s1 + $0xc0] sm:$0xff]  ;;  %v320_v61 = vld [vmem:[%s1614_s2 + $0x68] sm:$0xff]  ;;  %v338_v62 = vld [vmem:[%s1614_s2 + $0xf8] sm:$0xff] }
  0x1e   : > { %v263_v24 = vsub.f32 %v256_v15, %v262_v23  ;;  %v319_v63 = vld [vmem:[%s1614_s2 + $0x60] sm:$0xff]  ;;  %v273_v0 = vld [vmem:[%s1613_s1 + $0x28] sm:$0xff]  ;;  %v283_v1 = vld [vmem:[%s1613_s1 + $0x78] sm:$0xff] }
  0x1f   : > { %v293_v2 = vld [vmem:[%s1613_s1 + $0xc8] sm:$0xff]  ;;  %v303_v3 = vld [vmem:[%s1613_s1 + $0x118] sm:$0xff]  ;;  %v321_v5 = vld [vmem:[%s1614_s2 + $0x70] sm:$0xff] }
  0x20   : > { %387 = vperm.xlu2 %1086, %v315_v18   ;;  %264 = vst [vmem:[#allocation3] sm:$0x1] %v263_v24  ;;  %v340_v4 = vld [vmem:[%s1614_s2 + $0x108] sm:$0xff]  ;;  %v339_v6 = vld [vmem:[%s1614_s2 + $0x100] sm:$0xff]  ;;  %v274_v7 = vld [vmem:[%s1613_s1 + $0x30] sm:$0xff] }
  0x21   : > { %382 = vperm.xlu1 %1085, %v314_v21   ;;  %377 = vperm.xlu0 %1084, %v313_v22   ;;  %v284_v8 = vld [vmem:[%s1613_s1 + $0x80] sm:$0xff]  ;;  %v294_v9 = vld [vmem:[%s1613_s1 + $0xd0] sm:$0xff]  ;;  %v322_v13 = vld [vmem:[%s1614_s2 + $0x78] sm:$0xff] }
  0x22   : > { %v304_v10 = vld [vmem:[%s1613_s1 + $0x120] sm:$0xff]  ;;  %v341_v12 = vld [vmem:[%s1614_s2 + $0x110] sm:$0xff]  ;;  %v275_v14 = vld [vmem:[%s1613_s1 + $0x38] sm:$0xff] }
  0x23   : > { %v323_v11 = vld [vmem:[%s1614_s2 + $0x80] sm:$0xff]  ;;  %v285_v15 = vld [vmem:[%s1613_s1 + $0x88] sm:$0xff]  ;;  %v295_v16 = vld [vmem:[%s1613_s1 + $0xd8] sm:$0xff] }
  0x24   : > { %v305_v17 = vld [vmem:[%s1613_s1 + $0x128] sm:$0xff]  ;;  %v343_v18 = vld [vmem:[%s1614_s2 + $0x120] sm:$0xff]  ;;  %v342_v20 = vld [vmem:[%s1614_s2 + $0x118] sm:$0xff] }
  0x25   : > { %v324_v19 = vld [vmem:[%s1614_s2 + $0x88] sm:$0xff]  ;;  %v276_v21 = vld [vmem:[%s1613_s1 + $0x40] sm:$0xff]  ;;  %v286_v22 = vld [vmem:[%s1613_s1 + $0x90] sm:$0xff] }
  0x26   : > { %v296_v23 = vld [vmem:[%s1613_s1 + $0xe0] sm:$0xff]  ;;  %v868_v24 = vld [vmem:[#allocation4] sm:$0x1] }
  0x27   : > { %v306_v28 = vld [vmem:[#allocation3] sm:$0xff] }
  0x28   : > { %402 = vperm.xlu2 %1086, %v318_v25   ;;  %665 = vmatpush.msra.mxu0 %v306_v28  ;;  %v344_v25 = vld [vmem:[%s1614_s2 + $0x128] sm:$0xff] }
  0x29   : > { %397 = vperm.xlu1 %1085, %v317_v26   ;;  %392 = vperm.xlu0 %1084, %v316_v27   ;;  %v325_v26 = vld [vmem:[%s1614_s2 + $0x90] sm:$0xff]  ;;  %v277_v27 = vld [vmem:[%s1613_s1 + $0x48] sm:$0xff] }
  0x2a   : > { %1039 = vmatpush.msra.mxu1 %v306_v28  ;;  %1040 = vmatpush.msra.mxu2 %v306_v28 }
  0x2b   : > { %1041 = vmatpush.msra.mxu3 %v306_v28  ;;  %999 = vmatmul.msk.f32.vlgmr.msra.gmra.mxu0 %vm535_vm0, %v268_v29  ;;  %v287_v28 = vld [vmem:[%s1613_s1 + $0x98] sm:$0xff]  ;;  %v297_v29 = vld [vmem:[%s1613_s1 + $0xe8] sm:$0xff] }
  0x2c   : > { %1009 = vmatmul.msk.f32.vlgmr.msra.gmra.mxu1 %vm535_vm0, %v278_v30  ;;  %1019 = vmatmul.msk.f32.vlgmr.msra.gmra.mxu2 %vm535_vm0, %v288_v31 }
  0x2d   : > { %1029 = vmatmul.msk.f32.vlgmr.msra.gmra.mxu3 %vm535_vm0, %v298_v32 }
  0x30   : > { %452 = vperm.xlu2 %1086, %v328_v33  }
  0x31   : > { %447 = vperm.xlu1 %1085, %v327_v34   ;;  %442 = vperm.xlu0 %1084, %v326_v35  }
  0x33   : > { %1000 = vmatmul.msk.f32.gmra.mxu0 %vm535_vm0, %v269_v36 }
  0x34   : > { %1010 = vmatmul.msk.f32.gmra.mxu1 %vm535_vm0, %v279_v37  ;;  %1020 = vmatmul.msk.f32.gmra.mxu2 %vm535_vm0, %v289_v38 }
  0x35   : > { %1030 = vmatmul.msk.f32.gmra.mxu3 %vm535_vm0, %v299_v39 }
  0x38   : > { %467 = vperm.xlu2 %1086, %v331_v40  }
  0x39   : > { %462 = vperm.xlu1 %1085, %v330_v41   ;;  %457 = vperm.xlu0 %1084, %v329_v42  }
  0x3b   : > { %1001 = vmatmul.msk.f32.gmra.mxu0 %vm535_vm0, %v270_v43 }
  0x3c   : > { %1011 = vmatmul.msk.f32.gmra.mxu1 %vm535_vm0, %v280_v44  ;;  %1021 = vmatmul.msk.f32.gmra.mxu2 %vm535_vm0, %v290_v45 }
  0x3d   : > { %1031 = vmatmul.msk.f32.gmra.mxu3 %vm535_vm0, %v300_v46 }
  0x40   : > { %482 = vperm.xlu2 %1086, %v334_v47  }
  0x41   : > { %477 = vperm.xlu1 %1085, %v333_v48   ;;  %472 = vperm.xlu0 %1084, %v332_v49  }
  0x43   : > { %1002 = vmatmul.msk.f32.gmra.mxu0 %vm535_vm0, %v271_v50 }
  0x44   : > { %1012 = vmatmul.msk.f32.gmra.mxu1 %vm535_vm0, %v281_v51  ;;  %1022 = vmatmul.msk.f32.gmra.mxu2 %vm535_vm0, %v291_v52 }
  0x45   : > { %1032 = vmatmul.msk.f32.gmra.mxu3 %vm535_vm0, %v301_v53 }
  0x48   : > { %497 = vperm.xlu2 %1086, %v337_v54  }
  0x49   : > { %492 = vperm.xlu1 %1085, %v336_v55   ;;  %487 = vperm.xlu0 %1084, %v335_v56  }
  0x4b   : > { %1003 = vmatmul.msk.f32.gmra.mxu0 %vm535_vm0, %v272_v57 }
  0x4c   : > { %1013 = vmatmul.msk.f32.gmra.mxu1 %vm535_vm0, %v282_v58  ;;  %1023 = vmatmul.msk.f32.gmra.mxu2 %vm535_vm0, %v292_v59 }
  0x4d   : > { %1033 = vmatmul.msk.f32.gmra.mxu3 %vm535_vm0, %v302_v60 }
  0x50   : > { %412 = vperm.xlu2 %1086, %v320_v61  }
  0x51   : > { %502 = vperm.xlu1 %1085, %v338_v62   ;;  %407 = vperm.xlu0 %1084, %v319_v63  }
  0x53   : > { %1004 = vmatmul.msk.f32.gmra.mxu0 %vm535_vm0, %v273_v0 }
  0x54   : > { %1014 = vmatmul.msk.f32.gmra.mxu1 %vm535_vm0, %v283_v1  ;;  %1024 = vmatmul.msk.f32.gmra.mxu2 %vm535_vm0, %v293_v2 }
  0x55   : > { %1034 = vmatmul.msk.f32.gmra.mxu3 %vm535_vm0, %v303_v3 }
  0x58   : > { %512 = vperm.xlu2 %1086, %v340_v4  }
  0x59   : > { %417 = vperm.xlu1 %1085, %v321_v5   ;;  %507 = vperm.xlu0 %1084, %v339_v6  }
  0x5b   : > { %1005 = vmatmul.msk.f32.gmra.mxu0 %vm535_vm0, %v274_v7 }
  0x5c   : > { %1015 = vmatmul.msk.f32.gmra.mxu1 %vm535_vm0, %v284_v8  ;;  %1025 = vmatmul.msk.f32.gmra.mxu2 %vm535_vm0, %v294_v9 }
  0x5d   : > { %1035 = vmatmul.msk.f32.gmra.mxu3 %vm535_vm0, %v304_v10 }
  0x60   : > { %427 = vperm.xlu2 %1086, %v323_v11  }
  0x61   : > { %517 = vperm.xlu1 %1085, %v341_v12   ;;  %422 = vperm.xlu0 %1084, %v322_v13  }
  0x63   : > { %1006 = vmatmul.msk.f32.gmra.mxu0 %vm535_vm0, %v275_v14 }
  0x64   : > { %1016 = vmatmul.msk.f32.gmra.mxu1 %vm535_vm0, %v285_v15  ;;  %1026 = vmatmul.msk.f32.gmra.mxu2 %vm535_vm0, %v295_v16 }
  0x65   : > { %1036 = vmatmul.msk.f32.gmra.mxu3 %vm535_vm0, %v305_v17 }
  0x68   : > { %527 = vperm.xlu2 %1086, %v343_v18  }
  0x69   : > { %432 = vperm.xlu1 %1085, %v324_v19   ;;  %522 = vperm.xlu0 %1084, %v342_v20  }
  0x6a   : > { %v368_v33 = vpop.permute.xlu2 %367 }
  0x6b   : > { %1007 = vmatmul.msk.f32.gmra.mxu0 %vm535_vm0, %v276_v21 }
  0x6c   : > { %1017 = vmatmul.msk.f32.gmra.mxu1 %vm535_vm0, %v286_v22  ;;  %1027 = vmatmul.msk.f32.gmra.mxu2 %vm535_vm0, %v296_v23 }
  0x70   : > { %871 = vperm.xlu2 %1086, %v868_v24  }
  0x71   : > { %532 = vperm.xlu1 %1085, %v344_v25   ;;  %437 = vperm.xlu0 %1084, %v325_v26  }
  0x72   : > { %v373_v36 = vpop.permute.xlu2 %372 }
  0x73   : > { %1008 = vmatmul.msk.f32.gmra.mxu0 %vm535_vm0, %v277_v27 }
  0x74   : > { %1018 = vmatmul.msk.f32.gmra.mxu1 %vm535_vm0, %v287_v28  ;;  %1028 = vmatmul.msk.f32.gmra.mxu2 %vm535_vm0, %v297_v29 }
  0x7a   : > { %v1475_v41 = vpop.permute.xlu2 %387 }
  0x82   : > { %v1485_v47 = vpop.permute.xlu2 %402 }
  0x83   : > { %v348_v30 = vpop.permute.xlu0 %347  ;;  %v358_v31 = vpop.permute.xlu1 %357 }
  0x8a   : > { %v1493_v53 = vpop.permute.xlu2 %452 }
  0x8b   : > { %v353_v32 = vpop.permute.xlu0 %352  ;;  %v363_v34 = vpop.permute.xlu1 %362 }
  0x92   : > { %v1509_v63 = vpop.permute.xlu2 %467 }
  0x93   : > { %v1467_v35 = vpop.permute.xlu0 %377  ;;  %v1469_v37 = vpop.permute.xlu1 %382 }
  0x9a   : > { %v1521_v6 = vpop.permute.xlu2 %482 }
  0x9b   : > { %v1473_v40 = vpop.permute.xlu0 %392  ;;  %v1477_v42 = vpop.permute.xlu1 %397 }
  0xa2   : > { %v1531_v13 = vpop.permute.xlu2 %497 }
  0xa3   : > { %v1483_v46 = vpop.permute.xlu0 %442  ;;  %v448_v51 = vpop.permute.xlu1 %447 }
  0xa8   : > { %v667_v38 = vpop.f32.mrf.mxu0 }
  0xa9   : > { %v1471_v39 = vpop.f32.mrf.mxu1  ;;  %v668_v14 = vadd.f32 %v667_v38, %v348_v30 }
  0xab   : > { %v1491_v52 = vpop.permute.xlu0 %457  ;;  %v1499_v57 = vpop.permute.xlu1 %462  ;;  %v781_v20 = vand.u32 2147483647, %v668_v14 }
  0xaf   : > { %v1479_v43 = vpop.f32.mrf.mxu2 }
  0xb0   : > { %v670_v44 = vpop.f32.mrf.mxu0  ;;  %v1501_v58 = vpop.f32.mrf.mxu3 }
  0xb1   : > { %v1481_v45 = vpop.f32.mrf.mxu1  ;;  %v671_v15 = vadd.f32 %v670_v44, %v353_v32 }
  0xb3   : > { %v1503_v59 = vpop.permute.xlu0 %472  ;;  %v1511_v0 = vpop.permute.xlu1 %477  ;;  %v782_v21 = vand.u32 2147483647, %v671_v15 }
  0xb5   : > { %v819_v26 = vadd.f32 %v782_v21, %v781_v20 }
  0xb7   : > { %v1487_v48 = vpop.f32.mrf.mxu2 }
  0xb8   : > { %v673_v49 = vpop.f32.mrf.mxu0  ;;  %v1517_v4 = vpop.f32.mrf.mxu3 }
  0xb9   : > { %v1489_v50 = vpop.f32.mrf.mxu1  ;;  %v674_v16 = vadd.f32 %v673_v49, %v358_v31  ;;  %v413_v31 = vpop.permute.xlu2 %412 }
  0xbb   : > { %v1519_v5 = vpop.permute.xlu0 %487  ;;  %v1523_v7 = vpop.permute.xlu1 %492  ;;  %v783_v24 = vand.u32 2147483647, %v674_v16 }
  0xbd   : > { %v820_v32 = vadd.f32 %v819_v26, %v783_v24  ;;  %v698_v26 = vadd.f32 %v1471_v39, %v1477_v42 }
  0xbf   : > { %v1495_v54 = vpop.f32.mrf.mxu2 }
  0xc0   : > { %v676_v55 = vpop.f32.mrf.mxu0  ;;  %v1529_v11 = vpop.f32.mrf.mxu3 }
  0xc1   : > { %v1497_v56 = vpop.f32.mrf.mxu1  ;;  %v677_v22 = vadd.f32 %v676_v55, %v363_v34 }
  0xc3   : > { %v408_v12 = vpop.permute.xlu0 %407  ;;  %v1537_v23 = vpop.permute.xlu1 %502  ;;  %v784_v27 = vand.u32 2147483647, %v677_v22 }
  0xc5   : > { %v821_v34 = vadd.f32 %v820_v32, %v784_v27 }
  0xc7   : > { %v1505_v60 = vpop.f32.mrf.mxu2 }
  0xc8   : > { %v679_v61 = vpop.f32.mrf.mxu0  ;;  %v1539_v28 = vpop.f32.mrf.mxu3 }
  0xc9   : > { %v1507_v62 = vpop.f32.mrf.mxu1  ;;  %v680_v25 = vadd.f32 %v679_v61, %v368_v33 }
  0xcb   : > { %v1541_v29 = vpop.permute.xlu0 %507  ;;  %v785_v38 = vand.u32 2147483647, %v680_v25  ;;  %v418_v16 = vpop.permute.xlu1 %417 }
  0xcd   : > { %v822_v61 = vadd.f32 %v821_v34, %v785_v38  ;;  %v701_v38 = vadd.f32 %v1481_v45, %v1485_v47  ;;  %v791_v34 = vand.u32 2147483647, %v698_v26  ;;  %v707_v45 = vadd.f32 %v1497_v56, %v413_v31 }
  0xcf   : > { %v1513_v1 = vpop.f32.mrf.mxu2 }
  0xd0   : > { %v682_v2 = vpop.f32.mrf.mxu0  ;;  %v1549_v24 = vpop.f32.mrf.mxu3 }
  0xd1   : > { %v1515_v3 = vpop.f32.mrf.mxu1  ;;  %v683_v30 = vadd.f32 %v682_v2, %v373_v36  ;;  %v728_v2 = vadd.f32 %v1479_v43, %v448_v51 }
  0xd3   : > { %v786_v55 = vand.u32 2147483647, %v683_v30  ;;  %v731_v30 = vadd.f32 %v1487_v48, %v1493_v53  ;;  %v801_v51 = vand.u32 2147483647, %v728_v2  ;;  %v1566_v53 = vpop.permute.xlu1 %517  ;;  %v794_v2 = vand.u32 2147483647, %v707_v45 }
  0xd5   : > { %v823_v22 = vadd.f32 %v822_v61, %v786_v55  ;;  %v704_v55 = vadd.f32 %v1489_v50, %v408_v12  ;;  %v802_v48 = vand.u32 2147483647, %v731_v30  ;;  %v710_v50 = vadd.f32 %v1507_v62, %v418_v16 }
  0xd7   : > { %v1525_v8 = vpop.f32.mrf.mxu2 }
  0xd8   : > { %v685_v9 = vpop.f32.mrf.mxu0 }
  0xd9   : > { %v1527_v10 = vpop.f32.mrf.mxu1  ;;  %v686_v44 = vadd.f32 %v685_v9, %v1467_v35  ;;  %v423_v35 = vpop.permute.xlu0 %422 }
  0xdb   : > { %v787_v20 = vand.u32 2147483647, %v686_v44  ;;  %v734_v44 = vadd.f32 %v1495_v54, %v1491_v52  ;;  %v740_v52 = vadd.f32 %v1513_v1, %v1509_v63 }
  0xdd   : > { %v824_v9 = vadd.f32 %v823_v22, %v787_v20  ;;  %v792_v20 = vand.u32 2147483647, %v701_v38  ;;  %v803_v47 = vand.u32 2147483647, %v734_v44  ;;  %v793_v22 = vand.u32 2147483647, %v704_v55 }
  0xde   : > { %v805_v26 = vand.u32 2147483647, %v740_v52  ;;  %v761_v55 = vadd.f32 %v1517_v4, %v1537_v23  ;;  %v770_v23 = vadd.f32 %v1549_v24, %v1566_v53 }
  0xdf   : > { %v1533_v17 = vpop.f32.mrf.mxu2 }
  0xe0   : > { %v688_v18 = vpop.f32.mrf.mxu0  ;;  %v746_v63 = vadd.f32 %v1533_v17, %v1511_v0 }
  0xe1   : > { %v1535_v19 = vpop.f32.mrf.mxu1  ;;  %v689_v15 = vadd.f32 %v688_v18, %v1469_v37  ;;  %v1553_v18 = vpop.permute.xlu2 %512 }
  0xe2   : > { %v523_v56 = vpop.permute.xlu0 %522 }
  0xe3   : > { %v788_v36 = vand.u32 2147483647, %v689_v15 }
  0xe7   : > { %v748_v33 = vpop.f32.mrf.mxu2 }
  0xe8   : > { %v691_v49 = vpop.f32.mrf.mxu0 }
  0xe9   : > { %v1544_v14 = vpop.f32.mrf.mxu1  ;;  %v692_v21 = vadd.f32 %v691_v49, %v1475_v41  ;;  %v825_v41 = vadd.f32 %v824_v9, %v788_v36  ;;  %v713_v9 = vadd.f32 %v1515_v3, %v423_v35  ;;  %v428_v31 = vpop.permute.xlu2 %427  ;;  %v807_v35 = vand.u32 2147483647, %v746_v63 }
  0xea   : > { %v716_v62 = vadd.f32 %v1527_v10, %v428_v31  ;;  %v433_v3 = vpop.permute.xlu1 %432 }
  0xeb   : > { %v789_v25 = vand.u32 2147483647, %v692_v21  ;;  %v719_v0 = vadd.f32 %v1535_v19, %v433_v3 }
  0xec   : > { %v797_v44 = vand.u32 2147483647, %v716_v62 }
  0xed   : > { %v826_v39 = vadd.f32 %v825_v41, %v789_v25  ;;  %v772_v25 = vpop.f32.mrf.mxu3  ;;  %v796_v41 = vand.u32 2147483647, %v713_v9 }
  0xef   : > { %v751_v15 = vpop.f32.mrf.mxu2 }
  0xf0   : > { %v694_v27 = vpop.f32.mrf.mxu0 }
  0xf1   : > { %v724_v37 = vpop.f32.mrf.mxu1  ;;  %v695_v32 = vadd.f32 %v694_v27, %v1473_v40  ;;  %v737_v40 = vadd.f32 %v1505_v60, %v1499_v57  ;;  %v743_v57 = vadd.f32 %v1525_v8, %v1503_v59  ;;  %v749_v59 = vadd.f32 %v748_v33, %v1521_v6 }
  0xf2   : > { %v725_v43 = vadd.f32 %v724_v37, %v1483_v46  ;;  %v795_v37 = vand.u32 2147483647, %v710_v50  ;;  %v758_v6 = vadd.f32 %v1501_v58, %v1531_v13  ;;  %v812_v58 = vand.u32 2147483647, %v761_v55  ;;  %v895_v55 = vld [vmem:[#allocation2] sm:$0x1] }
  0xf3   : > { %v790_v42 = vand.u32 2147483647, %v695_v32  ;;  %v804_v12 = vand.u32 2147483647, %v737_v40  ;;  %v806_v16 = vand.u32 2147483647, %v743_v57  ;;  %v767_v13 = vadd.f32 %v1539_v28, %v1553_v18 }
  0xf4   : > { %v800_v49 = vand.u32 2147483647, %v725_v43  ;;  %v752_v43 = vadd.f32 %v751_v15, %v1519_v5  ;;  %v808_v17 = vand.u32 2147483647, %v749_v59  ;;  %v438_v15 = vpop.permute.xlu0 %437 }
  0xf5   : > { %v827_v46 = vadd.f32 %v826_v39, %v790_v42  ;;  %v775_v5 = vpop.f32.mrf.mxu3  ;;  %v722_v40 = vadd.f32 %v1544_v14, %v438_v15 }
  0xf6   : > { %v843_v61 = vadd.f32 %v801_v51, %v800_v49  ;;  %v809_v33 = vand.u32 2147483647, %v752_v43 }
  0xf7   : > { %v828_v54 = vadd.f32 %v827_v46, %v791_v34  ;;  %v754_v32 = vpop.f32.mrf.mxu2 }
  0xf8   : > { %v844_v21 = vadd.f32 %v843_v61, %v802_v48  ;;  %v755_v10 = vadd.f32 %v754_v32, %v1523_v7  ;;  %v798_v48 = vand.u32 2147483647, %v719_v0  ;;  %v811_v61 = vand.u32 2147483647, %v758_v6 }
  0xf9   : > { %v829_v60 = vadd.f32 %v828_v54, %v792_v20  ;;  %v764_v7 = vadd.f32 %v1529_v11, %v1541_v29  ;;  %v815_v11 = vand.u32 2147483647, %v770_v23 }
  0xfa   : > { %v845_v36 = vadd.f32 %v844_v21, %v803_v47  ;;  %v810_v19 = vand.u32 2147483647, %v755_v10  ;;  %v799_v47 = vand.u32 2147483647, %v722_v40  ;;  %v814_v21 = vand.u32 2147483647, %v767_v13 }
  0xfb   : > { %v830_v1 = vadd.f32 %v829_v60, %v793_v22  ;;  %v813_v4 = vand.u32 2147483647, %v764_v7  ;;  %v773_v22 = vadd.f32 %v772_v25, %v523_v56 }
  0xfc   : > { %v846_v27 = vadd.f32 %v845_v36, %v804_v12  ;;  %v528_v12 = vpop.permute.xlu2 %527 }
  0xfd   : > { %v831_v8 = vadd.f32 %v830_v1, %v794_v2  ;;  %v778_v57 = vpop.f32.mrf.mxu3  ;;  %v776_v29 = vadd.f32 %v775_v5, %v528_v12  ;;  %v533_v2 = vpop.permute.xlu1 %532  ;;  %v816_v9 = vand.u32 2147483647, %v773_v22 }
  0xfe   : > { %v847_v30 = vadd.f32 %v846_v27, %v805_v26  ;;  %v779_v28 = vadd.f32 %v778_v57, %v533_v2 }
  0xff   : > { %v832_v51 = vadd.f32 %v831_v8, %v795_v37  ;;  %v817_v31 = vand.u32 2147483647, %v776_v29 }
 0x100   : > { %v848_v38 = vadd.f32 %v847_v30, %v806_v16  ;;  %v818_v1 = vand.u32 2147483647, %v779_v28 }
 0x101   : > { %v833_v39 = vadd.f32 %v832_v51, %v796_v41 }
 0x102   : > { %v849_v42 = vadd.f32 %v848_v38, %v807_v35 }
 0x103   : > { %v834_v49 = vadd.f32 %v833_v39, %v797_v44 }
 0x104   : > { %v850_v34 = vadd.f32 %v849_v42, %v808_v17  ;;  %v872_v30 = vpop.permute.xlu2 %871 }
 0x105   : > { %v835_v20 = vadd.f32 %v834_v49, %v798_v48  ;;  %v874_v3 = vperm.slane %v872_v30, 0 }
 0x106   : > { %v851_v46 = vadd.f32 %v850_v34, %v809_v33 }
 0x107   : > { %v836_v54 = vadd.f32 %v835_v20, %v799_v47 }
 0x108   : > { %v852_v45 = vadd.f32 %v851_v46, %v810_v19 }
 0x109   : > { %v837_v60 = vrot.slane %v836_v54, 4 }
 0x10a   : > { %v853_v52 = vadd.f32 %v852_v45, %v811_v61 }
 0x10b   : > { %v838_v26 = vadd.f32 %v837_v60, %v836_v54 }
 0x10c   : > { %v854_v14 = vadd.f32 %v853_v52, %v812_v58 }
 0x10d   : > { %v839_v53 = vrot.slane %v838_v26, 2 }
 0x10e   : > { %v855_v50 = vadd.f32 %v854_v14, %v813_v4 }
 0x10f   : > { %v840_v25 = vadd.f32 %v839_v53, %v838_v26 }
 0x110   : > { %v856_v36 = vadd.f32 %v855_v50, %v814_v21 }
 0x111   : > { %v841_v16 = vrot.slane %v840_v25, 1 }
 0x112   : > { %v857_v18 = vadd.f32 %v856_v36, %v815_v11 }
 0x113   : > { %v842_v41 = vadd.f32 %v841_v16, %v840_v25 }
 0x114   : > { %v858_v63 = vadd.f32 %v857_v18, %v816_v9 }
 0x116   : > { %v859_v24 = vadd.f32 %v858_v63, %v817_v31 }
 0x118   : > { %v860_v27 = vadd.f32 %v859_v24, %v818_v1 }
 0x11a   : > { %v861_v37 = vrot.slane %v860_v27, 4 }
 0x11c   : > { %v862_v56 = vadd.f32 %v861_v37, %v860_v27 }
 0x11e   : > { %v863_v62 = vrot.slane %v862_v56, 2 }
 0x120   : > { %v864_v59 = vadd.f32 %v863_v62, %v862_v56 }
 0x122   : > { %v865_v8 = vrot.slane %v864_v59, 1 }
 0x124   : > { %v866_v32 = vadd.f32 %v865_v8, %v864_v59 }
 0x126   : > { %v867_v35 = vsub.f32 %v842_v41, %v866_v32 }
 0x128   : > { %v875_v43 = vadd.f32 %v874_v3, %v867_v35 }
 0x12a   : > { %v876_v51 = vsub.f32 0.0, %v875_v43 }
 0x12c   : > { %v877_v38 = vmul.f32 1.442695, %v876_v51 }
 0x12e   : > { %1087 = vpow2.f32 %v877_v38 }
 0x134   : > { %v1088_v44 = vpop.eup %1087 }
 0x135   : > { %v879_v0 = vadd.f32 1.0, %v1088_v44 }
 0x137   : > { %1089 = vrcp.f32 %v879_v0  ;;  %v891_v42 = vand.u32 2147483648, %v879_v0  ;;  %v889_v33 = vand.u32 2147483647, %v879_v0  ;;  %vm885_vm2 = vweird.f32 %v879_v0 }
 0x139   : > { %v892_v34 = vor.u32 1.1754944e-38, %v891_v42  ;;  %vm890_vm4 = vcmp.eq.f32.partialorder %v889_v33, 8.507059e+37 }
 0x13d   : > { %v1090_v17 = vpop.eup %1089 }
 0x13e   : > { %v881_v39 = vmul.f32 %v1090_v17, %v879_v0  ;;  %vm886_vm1 = vweird.f32 %v1090_v17 }
 0x13f   : > { %vm887_vm3 = vmor %vm885_vm2, %vm886_vm1 }
 0x140   : > { %v882_v10 = vsub.f32 1.0, %v881_v39 }
 0x142   : > { %v883_v6 = vmul.f32 %v1090_v17, %v882_v10 }
 0x144   : > { %v884_v49 = vadd.f32 %v1090_v17, %v883_v6 }
 0x146   : > { %v888_v5 = vsel %vm887_vm3, %v1090_v17, %v884_v49 }
 0x147   : > { %v893_v15 = vsel %vm890_vm4, %v892_v34, %v888_v5 }
 0x148   : > { %v896_v48 = vadd.f32 %v895_v55, %v893_v15 }
 0x14a   : > { %897 = vst [vmem:[#allocation2] sm:$0x1] %v896_v48 }
 0x151   : > { %v901_v40 = vld [vmem:[#allocation2] sm:$0x1] }
 0x152   : > { %v903_v19 = vsel %vm902_vm5, %v901_v40, 0.0 }
 0x153   : > { %904 = vadd.xlane.f32.xlu0 %v903_v19 }
 0x1c6   : > { %v905_v46 = vpop.xlane.xlu0 %904 }
 0x1c7   : > { %907 = vst.msk [vmem:[%s242_s10] sm:$0x1] %vm906_vm6, %v905_v46 }
 0x1c8 PF: > { %s16_s21 = sadd.s32 1, %s1129_s21   ;;  %s1617_s17 = smov %s1121_s19 }
 0x1c9   : > { %p13_p7 = scmp.ge.s32.totalorder %s16_s21, 6   ;;  %s1618_s18 = smov %s1125_s20 }
 0x1ca   : > { %s1619_s19 = smov %s1622_s3  ;;  %s1620_s20 = smov %s1626_s22 }
 0x1cb   :  { %15 = sbr.rel (!%p13_p7) target bundleno = 3 (0x3), region = 74 }

</bundles_post_ra>
